<compile_context>
chip_gen: v7x
topology: tpu7x:2x2x1
jax: 0.10.0
libtpu: 0.0.40
codegen_flags: <defaults>
</compile_context>

<pallas_src>
import functools

import jax
import jax.numpy as jnp
from jax.experimental import pallas as pl
from jax.experimental.pallas import tpu as pltpu

LN_EPS = 1e-5


def _layernorm(x, gamma, beta, eps):
    # PyTorch nn.LayerNorm: biased variance, eps inside sqrt.
    mean = jnp.mean(x, axis=-1, keepdims=True)
    var = jnp.mean(jnp.square(x - mean), axis=-1, keepdims=True)
    return (x - mean) * jax.lax.rsqrt(var + eps) * gamma + beta


# ----------------------------- embedding gather ------------------------------

def _embed_kernel(ids_ref, wte_row, wpe_row, out_ref):
    # ids_ref is the scalar-prefetch ref (consumed by the index_maps).
    del ids_ref
    out_ref[...] = wte_row[...] + wpe_row[...]


def embed_call(input_ids, wte, wpe):
    """wte[input_ids] + wpe[positions] via DMA row gather (scalar prefetch)."""
    B, S = input_ids.shape
    V, H = wte.shape
    P = wpe.shape[0]
    flat_ids = input_ids.reshape(B * S).astype(jnp.int32)
    # (rows, 1, H) layout so the last two block dims equal the full array dims.
    wte3 = wte.reshape(V, 1, H)
    wpe3 = wpe.reshape(P, 1, H)

    grid_spec = pltpu.PrefetchScalarGridSpec(
        num_scalar_prefetch=1,
        grid=(B * S,),
        in_specs=[
            pl.BlockSpec((1, 1, H), lambda i, ids: (ids[i], 0, 0)),   # token row
            pl.BlockSpec((1, 1, H), lambda i, ids: (i % S, 0, 0)),    # position row
        ],
        out_specs=pl.BlockSpec((1, 1, H), lambda i, ids: (i, 0, 0)),
    )
    out = pl.pallas_call(
        _embed_kernel,
        out_shape=jax.ShapeDtypeStruct((B * S, 1, H), jnp.float32),
        grid_spec=grid_spec,
        compiler_params=pltpu.CompilerParams(
            dimension_semantics=("arbitrary",)),
    )(flat_ids, wte3, wpe3)
    return out.reshape(B, S, H)


# --------------------------- stacked transformer ------------------------------

def _layers_kernel(h0_ref, ln1_g, ln1_b, w_qkv, b_qkv, w_ap, b_ap,
                   ln2_g, ln2_b, w_fc, b_fc, w_mp, b_mp, lnf_g, lnf_b,
                   hs_ref, attn_ref, last_ref, h_carry,
                   *, num_heads, eps):
    """Grid step (b, l): apply TfmrBlock l to batch row b.

    Hidden state is carried across the layer axis in VMEM scratch; the final
    LayerNorm is fused into the last layer step.
    """
    l = pl.program_id(1)

    @pl.when(l == 0)
    def _():
        h_carry[...] = h0_ref[0]          # embeddings (dropout = eval identity)

    x = h_carry[...]                      # (S, H) f32
    hs_ref[0, 0] = x                      # record this layer's input

    S, H = x.shape
    hd = H // num_heads
    scale = 1.0 / (float(hd) ** 0.5)      # scale_attn_weights, folded into q
    bf16 = jnp.bfloat16

    # --------------------------- attention ---------------------------
    residual = x
    xn = _layernorm(x, ln1_g[0], ln1_b[0], eps)
    qkv = jnp.dot(xn.astype(bf16), w_qkv[0],
                  preferred_element_type=jnp.float32) + b_qkv[0]      # (S, 3H)

    def split_heads(t):                    # (S, H) -> (nh, S, hd)
        return t.reshape(S, num_heads, hd).transpose(1, 0, 2)

    q = split_heads(qkv[:, 0 * H:1 * H]) * scale
    k = split_heads(qkv[:, 1 * H:2 * H])
    v = split_heads(qkv[:, 2 * H:3 * H])

    # batched over heads -> one MXU pass per matmul (no per-head loop / concat)
    s = jnp.einsum('hqd,hkd->hqk', q.astype(bf16), k.astype(bf16),
                   preferred_element_type=jnp.float32)                # (nh,S,S)
    qi = jax.lax.broadcasted_iota(jnp.int32, (1, S, S), 1)
    ki = jax.lax.broadcasted_iota(jnp.int32, (1, S, S), 2)
    s = jnp.where(ki <= qi, s, jnp.float32(-10000.0))                 # causal
    s = s - jnp.max(s, axis=-1, keepdims=True)
    e = jnp.exp(s)
    p = e * pl.reciprocal(jnp.sum(e, axis=-1, keepdims=True), approx=True)
    attn_ref[0, 0] = p                                                # (nh,S,S)

    ctx = jnp.einsum('hqk,hkd->hqd', p.astype(bf16), v.astype(bf16),
                     preferred_element_type=jnp.float32)              # (nh,S,hd)
    ctx = ctx.transpose(1, 0, 2).reshape(S, H)                        # merge heads
    attn_out = jnp.dot(ctx.astype(bf16), w_ap[0],
                       preferred_element_type=jnp.float32) + b_ap[0]
    h1 = residual + attn_out

    # ------------------------------ MLP -------------------------------
    xn2 = _layernorm(h1, ln2_g[0], ln2_b[0], eps)
    f = jnp.dot(xn2.astype(bf16), w_fc[0],
                preferred_element_type=jnp.float32) + b_fc[0]
    f = jax.nn.gelu(f, approximate=False)             # exact erf GELU (F.gelu)
    f = jnp.dot(f.astype(bf16), w_mp[0],
                preferred_element_type=jnp.float32) + b_mp[0]
    h_new = h1 + f
    h_carry[...] = h_new

    @pl.when(l == pl.num_programs(1) - 1)
    def _():                               # fused final LayerNorm (ln_f)
        last_ref[0] = _layernorm(h_new, lnf_g[...], lnf_b[...], eps)


def transformer_call(h0, params, cfg):
    B, S, H = h0.shape
    nh, L, I = cfg['heads'], cfg['layers'], cfg['inner']
    bf16 = jnp.bfloat16

    # bf16 weight copies for the MXU (halves weight HBM/VMEM traffic).
    w_attn = params['w_attn'].astype(bf16)
    w_proj = params['w_proj'].astype(bf16)
    w_fc = params['w_fc'].astype(bf16)
    w_mp = params['w_mp'].astype(bf16)

    def layer_spec(shape):   # stacked (L, a, b) params -> layer l's slab
        return pl.BlockSpec((1,) + shape[1:], lambda b, l: (l, 0, 0))

    in_specs = [
        pl.BlockSpec((1, S, H), lambda b, l: (b, 0, 0)),        # embeddings
        layer_spec((L, 1, H)), layer_spec((L, 1, H)),           # ln1 g/b
        layer_spec((L, H, 3 * H)), layer_spec((L, 1, 3 * H)),   # c_attn w/b
        layer_spec((L, H, H)), layer_spec((L, 1, H)),           # c_proj w/b
        layer_spec((L, 1, H)), layer_spec((L, 1, H)),           # ln2 g/b
        layer_spec((L, H, I)), layer_spec((L, 1, I)),           # c_fc w/b
        layer_spec((L, I, H)), layer_spec((L, 1, H)),           # mlp c_proj w/b
        pl.BlockSpec((1, H), lambda b, l: (0, 0)),              # ln_f gamma
        pl.BlockSpec((1, H), lambda b, l: (0, 0)),              # ln_f beta
    ]
    out_specs = (
        pl.BlockSpec((1, 1, S, H), lambda b, l: (l, b, 0, 0)),        # layer inputs
        pl.BlockSpec((1, 1, nh, S, S), lambda b, l: (l, b, 0, 0, 0)),  # attn probs
        pl.BlockSpec((1, S, H), lambda b, l: (b, 0, 0)),               # ln_f output
    )
    out_shape = (
        jax.ShapeDtypeStruct((L, B, S, H), jnp.float32),
        jax.ShapeDtypeStruct((L, B, nh, S, S), jnp.float32),
        jax.ShapeDtypeStruct((B, S, H), jnp.float32),
    )

    return pl.pallas_call(
        functools.partial(_layers_kernel, num_heads=nh, eps=LN_EPS),
        out_shape=out_shape,
        grid=(B, L),
        in_specs=in_specs,
        out_specs=out_specs,
        scratch_shapes=[pltpu.VMEM((S, H), jnp.float32)],   # carried hidden state
        compiler_params=pltpu.CompilerParams(
            # batch axis shards across TensorCores (v7x); layer axis is sequential
            dimension_semantics=("parallel", "arbitrary"),
            vmem_limit_bytes=64 * 1024 * 1024),
    )(h0, params['ln1_g'], params['ln1_b'], w_attn, params['b_attn'],
      w_proj, params['b_proj'], params['ln2_g'], params['ln2_b'],
      w_fc, params['b_fc'], w_mp, params['b_mp'],
      params['lnf_g'], params['lnf_b'])


# ------------------------------- model wrapper ------------------------------

def tfmr_model_forward(params, input_ids, cfg):
    """Equivalent of TfmrModel.forward(input_ids, past_key_values=None, use_cache=None)."""
    L = cfg['layers']
    h0 = embed_call(input_ids, params['wte'], params['wpe'])
    layer_inputs, attn_probs, last_hidden = transformer_call(h0, params, cfg)
    hidden_states = tuple(layer_inputs[l] for l in range(L)) + (last_hidden,)
    attentions = tuple(attn_probs[l] for l in range(L))
    return {
        'last_hidden_state': last_hidden,
        'past_key_values': None,          # use_cache is falsy
        'hidden_states': hidden_states,
        'attentions': attentions,
        'cross_attentions': (),
    }


# ------------------------------ parameter init -------------------------------

def init_params(key, cfg):
    H, V, P = cfg['hidden'], cfg['vocab'], cfg['max_pos']
    L, I = cfg['layers'], cfg['inner']
    k = jax.random.split(key, 6)

    def normal(kk, shape, std):
        return (std * jax.random.normal(kk, shape)).astype(jnp.float32)

    return {
        'wte': normal(k[0], (V, H), 1.0),        # nn.Embedding default N(0,1)
        'wpe': normal(k[1], (P, H), 1.0),
        # per-layer params stacked along a leading L axis (weight prefetching)
        'w_attn': normal(k[2], (L, H, 3 * H), 0.02),   # TransposeLinear: (nx, nf)
        'b_attn': jnp.zeros((L, 1, 3 * H), jnp.float32),
        'w_proj': normal(k[3], (L, H, H), 0.02),
        'b_proj': jnp.zeros((L, 1, H), jnp.float32),
        'w_fc': normal(k[4], (L, H, I), 0.02),
        'b_fc': jnp.zeros((L, 1, I), jnp.float32),
        'w_mp': normal(k[5], (L, I, H), 0.02),
        'b_mp': jnp.zeros((L, 1, H), jnp.float32),
        'ln1_g': jnp.ones((L, 1, H), jnp.float32),
        'ln1_b': jnp.zeros((L, 1, H), jnp.float32),
        'ln2_g': jnp.ones((L, 1, H), jnp.float32),
        'ln2_b': jnp.zeros((L, 1, H), jnp.float32),
        'lnf_g': jnp.ones((1, H), jnp.float32),
        'lnf_b': jnp.zeros((1, H), jnp.float32),
    }


# ------------------------------ pure-JAX reference ---------------------------

def ref_forward(params, input_ids, cfg):
    H, nh, L = cfg['hidden'], cfg['heads'], cfg['layers']
    hd = H // nh
    B, S = input_ids.shape
    h = params['wte'][input_ids] + params['wpe'][:S][None]
    hidden_states, attentions = [], []
    for l in range(L):
        hidden_states.append(h)
        x = _layernorm(h, params['ln1_g'][l], params['ln1_b'][l], LN_EPS)
        qkv = (x.reshape(B * S, H) @ params['w_attn'][l] + params['b_attn'][l]
               ).reshape(B, S, 3 * H)
        q, k, v = qkv[..., :H], qkv[..., H:2 * H], qkv[..., 2 * H:]
        sh = lambda t: t.reshape(B, S, nh, hd).transpose(0, 2, 1, 3)
        q, k, v = sh(q), sh(k), sh(v)
        s = jnp.einsum('bhqd,bhkd->bhqk', q, k) / (hd ** 0.5)
        s = jnp.where(jnp.tril(jnp.ones((S, S), bool)), s, -10000.0)
        p = jax.nn.softmax(s, axis=-1)
        attentions.append(p)
        ctx = jnp.einsum('bhqk,bhkd->bhqd', p, v).transpose(0, 2, 1, 3).reshape(B * S, H)
        h = h + (ctx @ params['w_proj'][l] + params['b_proj'][l]).reshape(B, S, H)
        x2 = _layernorm(h, params['ln2_g'][l], params['ln2_b'][l], LN_EPS)
        f = x2.reshape(B * S, H) @ params['w_fc'][l] + params['b_fc'][l]
        f = jax.nn.gelu(f, approximate=False)
        h = h + (f @ params['w_mp'][l] + params['b_mp'][l]).reshape(B, S, H)
    last = _layernorm(h, params['lnf_g'], params['lnf_b'], LN_EPS)
    hidden_states.append(last)
    return last, hidden_states, attentions


# ------------------------------------ main -----------------------------------

if __name__ == "__main__":
    cfg = dict(vocab=64, max_pos=16, hidden=32, heads=4, layers=2, inner=128)
    key = jax.random.PRNGKey(0)
    pkey, ikey = jax.random.split(key)
    params = init_params(pkey, cfg)

    B, S = 2, 8
    input_ids = jax.random.randint(ikey, (B, S), 0, cfg['vocab'], dtype=jnp.int32)

    out = tfmr_model_forward(params, input_ids, cfg)
    jax.block_until_ready(out['last_hidden_state'])

    assert out['last_hidden_state'].shape == (B, S, cfg['hidden'])
    assert len(out['hidden_states']) == cfg['layers'] + 1
    assert len(out['attentions']) == cfg['layers']
    assert out['attentions'][0].shape == (B, cfg['heads'], S, S)

    ref_last, ref_hs, ref_attn = ref_forward(params, input_ids, cfg)

    # embeddings go through an exact f32 gather+add -> tight tolerance
    emb_err = float(jnp.max(jnp.abs(out['hidden_states'][0] - ref_hs[0])))
    assert emb_err < 1e-5, f"embedding mismatch: {emb_err}"

    # matmuls use bf16 operands (f32 accumulation) + approx reciprocal in softmax,
    # so compare against the f32 reference with a correspondingly loose tolerance.
    attn_err = max(float(jnp.max(jnp.abs(a - r)))
                   for a, r in zip(out['attentions'], ref_attn))
    assert attn_err < 2e-2, f"attention prob mismatch: {attn_err}"
    last_err = float(jnp.max(jnp.abs(out['last_hidden_state'] - ref_last)))
    assert last_err < 5e-2, f"last_hidden_state mismatch: {last_err}"

    print("KERNEL_OK")
</pallas_src>

<mosaic_0001>
module attributes {stable_mosaic.version = 11 : i64} {
  func.func @_embed_kernel(%arg0: i32, %arg1: memref<16xi32, #tpu.memory_space<smem>>, %arg2: memref<1x1x32xf32, #tpu.memory_space<vmem>>, %arg3: memref<1x1x32xf32, #tpu.memory_space<vmem>>, %arg4: memref<1x1x32xf32, #tpu.memory_space<vmem>>) attributes {dimension_semantics = [#tpu.dimension_semantics<arbitrary>], iteration_bounds = array<i64: 16>, scalar_prefetch = 1 : i64, scratch_operands = 0 : i64, tpu.core_type = #tpu.core_type<tc>, window_params = [{transform_indices = @transform_0, window_bounds = array<i64: 1, 1, 32>}, {transform_indices = @transform_1, window_bounds = array<i64: 1, 1, 32>}, {transform_indices = @transform_2, window_bounds = array<i64: 1, 1, 32>}]} {
    %c0 = arith.constant 0 : index
    %c0_0 = arith.constant 0 : index
    %c0_1 = arith.constant 0 : index
    %0 = vector.load %arg2[%c0, %c0_0, %c0_1] : memref<1x1x32xf32, #tpu.memory_space<vmem>>, vector<1x1x32xf32>
    %c0_2 = arith.constant 0 : index
    %c0_3 = arith.constant 0 : index
    %c0_4 = arith.constant 0 : index
    %1 = vector.load %arg3[%c0_2, %c0_3, %c0_4] : memref<1x1x32xf32, #tpu.memory_space<vmem>>, vector<1x1x32xf32>
    %2 = arith.addf %0, %1 : vector<1x1x32xf32>
    %c0_5 = arith.constant 0 : index
    %c0_6 = arith.constant 0 : index
    %c0_7 = arith.constant 0 : index
    %3 = vector.load %arg4[%c0_5, %c0_6, %c0_7] : memref<1x1x32xf32, #tpu.memory_space<vmem>>, vector<1x1x32xf32>
    tpu.vector_store %arg4[%c0_5, %c0_6, %c0_7], %2 {strides = array<i32>} : memref<1x1x32xf32, #tpu.memory_space<vmem>>, vector<1x1x32xf32>,
    return
  }
  func.func @transform_0(%arg0: i32, %arg1: memref<16xi32, #tpu.memory_space<smem>>) -> (i32, i32, i32) {
    %0 = arith.index_cast %arg0 : i32 to index
    %1 = memref.load %arg1[%0] : memref<16xi32, #tpu.memory_space<smem>>
    %c0_i32 = arith.constant 0 : i32
    %c0_i32_0 = arith.constant 0 : i32
    %c0_i32_1 = arith.constant 0 : i32
    return %1, %c0_i32, %c0_i32_0 : i32, i32, i32
  }
  func.func @transform_1(%arg0: i32, %arg1: memref<16xi32, #tpu.memory_space<smem>>) -> (i32, i32, i32) {
    %c8_i32 = arith.constant 8 : i32
    %c0_i32 = arith.constant 0 : i32
    %0 = arith.cmpi eq, %c8_i32, %c0_i32 : i32
    %c1_i32 = arith.constant 1 : i32
    %1 = arith.select %0, %c1_i32, %c8_i32 : i32
    %2 = arith.remsi %arg0, %1 : i32
    %c0_i32_0 = arith.constant 0 : i32
    %3 = arith.cmpi ne, %2, %c0_i32_0 : i32
    %c0_i32_1 = arith.constant 0 : i32
    %4 = arith.cmpi slt, %2, %c0_i32_1 : i32
    %c0_i32_2 = arith.constant 0 : i32
    %5 = arith.cmpi slt, %1, %c0_i32_2 : i32
    %6 = arith.xori %4, %5 : i1
    %7 = arith.andi %6, %3 : i1
    %8 = arith.addi %2, %1 : i32
    %9 = arith.select %7, %8, %2 : i32
    %c0_i32_3 = arith.constant 0 : i32
    %c0_i32_4 = arith.constant 0 : i32
    %c0_i32_5 = arith.constant 0 : i32
    return %9, %c0_i32_3, %c0_i32_4 : i32, i32, i32
  }
  func.func @transform_2(%arg0: i32, %arg1: memref<16xi32, #tpu.memory_space<smem>>) -> (i32, i32, i32) {
    %c0_i32 = arith.constant 0 : i32
    %c0_i32_0 = arith.constant 0 : i32
    %c0_i32_1 = arith.constant 0 : i32
    return %arg0, %c0_i32, %c0_i32_0 : i32, i32, i32
  }
}

</mosaic_0001>

<bundles_post_ra>
// kernel: tpu_custom_call.1
= control target key start
LH: loop header
LB: loop body
LE: loop exit
PB: predicated region body
PF: predicated region fallthrough
CT: control target
= control target key end

     0   :  { %s590_s0 = inlined_call_operand.vmem [shape: s32[16], index: 0, kind: input, shape index: {}]   ;;  %s591_s1 = inlined_call_operand.vmem [shape: f32[64,1,32], index: 1, kind: input, shape index: {}]   ;;  %s592_s2 = inlined_call_operand.vmem [shape: f32[16,1,32], index: 2, kind: input, shape index: {}]   ;;  %s593_s3 = inlined_call_operand.hbm [shape: f32[16,1,32], index: 3, kind: output, shape index: {}]  }
   0x1   :  { %s8_s14 = sshll.u32 %s590_s0, 4  ;;  %s9_s14 = int_to_ptr.vmem [resolvable:$true] %s8_s14 }
   0x2   :  { %s382_s15 = scalar_lea.vmem %s9_s14, 16  ;;  %p387_p1 = scmp.lt.s32.totalorder %s9_s14, %s9_s14 }
   0x3   :  { %p383_p0 = scmp.ne.s32.totalorder %s9_s14, %s382_s15  ;;  %p388_p2 = scmp.lt.s32.totalorder %s382_s15, %s382_s15 }
   0x5   :  { %p389_p3 = por %p388_p2, %p387_p1 }
   0x7   :  { %p390_p4 = pnand %p389_p3, %p383_p0 }
   0x9   :  { %393 = shalt.err (!%p390_p4)  }
   0xa   :  { %s460_s16 = smov [#allocation3]  }
   0xb   :  { %11 = dma.vmem_to_smem %s9_s14, 16, %s460_s16, [#allocation2] }
   0xc   :  { %438 = dma.done.wait [#allocation2], 16 }
   0xd   :  { %439 = vsyncadd [#allocation2], 4294967280 }
   0xe   :  { %13 = sfence }
   0xf   :  { %14 = vsyncpa [#allocation5], 0 }
  0x10   :  { %16 = vsyncpa [#allocation5 + $0x1], 0  ;;  %s485_s17 = smov 0   ;;  %s487_s18 = smov 0  }
  0x11   :  { %s489_s0 = smov 0   ;;  %s491_s19 = smov 0  }
  0x12 LB: > { %s506_s20 = sadd.s32 4294967295, %s458_s19   ;;  %s326_s21 = sadd.s32 4294967294, %s458_s19   ;;  %s458_s19 = sphi %s491_s19, %s599_s19   ;;  %s454_s0 = sphi %s489_s0, %s598_s0   ;;  %s450_s18 = sphi %s487_s18, %s597_s18   ;;  %s446_s17 = sphi %s485_s17, %s596_s17  }
  0x13   : > { %s510_s22 = sadd.s32 1, %s458_s19   ;;  %s107_s23 = sadd.s32 1, %s454_s0 }
  0x14   : > { %s104_s24 = ssub.s32 %s458_s19, %s510_s22  ;;  %p117_p5 = scmp.ne.s32.totalorder %s454_s0, %s450_s18 }
  0x15   : > { %p105_p6 = scmp.eq.s32.totalorder %s104_s24, 0  ;;  %p118_p7 = scmp.eq.s32.totalorder %s506_s20, 15 }
  0x16   : > { %p123_p8 = scmp.ne.s32.totalorder %s450_s18, %s446_s17  ;;  %p124_p9 = scmp.eq.s32.totalorder %s326_s21, 15 }
  0x17   : > { %s521_s25 = scalar_select %p105_p6, %s454_s0, %s107_s23  }
  0x18   : > { %p523_p10 = por %p118_p7, %p117_p5  ;;  %p527_p11 = por %p124_p9, %p123_p8 }
  0x19   : > { %p335_p12 = scmp.ge.s32.totalorder %s458_s19, 1  ;;  %p180_p13 = scmp.lt.s32.totalorder %s458_s19, 17 }
  0x1b   : > { %p181_p0 = pnand %p335_p12, %p180_p13 }
  0x1c   : > { %s215_s28 = sld [smem:[#allocation3 + %s506_s20]] (!%p181_p0)  ;;  %s221_s29 = ssub.s32 (!%p181_p0), 0, %s506_s20  ;;  %vm250_vm0 = vcmask (!%p181_p0), 253952  }
  0x1d   : > { %184 = sbr.rel (%p181_p0) target bundleno = 62 (0x3e), region = 28  ;;  %p220_p1 = scmp.lt.s32.totalorder (!%p181_p0), %s506_s20, 0 }
  0x1e   : > { %s336_s30 = smin.u32 (!%p181_p0), %s506_s20, %s221_s29  ;;  %s213_s6 = sand.u32 (!%p181_p0), 1, %s450_s18  }
  0x1f   : > { %s223_s4 = sand.u32 (!%p181_p0), 7, %s336_s30   ;;  %s214_s11 = scalar_lea.vmem (!%p181_p0), [#allocation4], %s213_s6 }
  0x20   : > { %s224_s5 = ssub.s32 (!%p181_p0), 0, %s223_s4  ;;  %s265_s12 = sshll.u32 (!%p181_p0), %s214_s11, 4  ;;  %s545_s12 = int_to_ptr.vmem [resolvable:$true] %s265_s12 }
  0x21   : > { %s339_s13 = sshll.u32 (!%p181_p0), %s506_s20, 4  ;;  %s394_s20 = scalar_lea.vmem (!%p181_p0), %s545_s12, 16 }
  0x22   : > { %p216_p2 = scmp.lt.s32.totalorder (!%p181_p0), %s215_s28, 63  ;;  %s550_s24 = scalar_lea.hbm (!%p181_p0), %s593_s3, %s339_s13 }
  0x23   : > { %p395_p5 = scmp.ne.s32.totalorder (!%p181_p0), %s545_s12, %s394_s20  ;;  %s461_s29 = smov (!%p181_p0), [#allocation4]  }
  0x24   : > { %s601_s5 = smov (!%p220_p1, %s224_s5), %s223_s4  ;;  %s603_s28 = smov (!%p216_p2, %s215_s28), 63 }
  0x25   : > { %p338_p3 = scmp.lt.s32.totalorder %s601_s5, 0  ;;  %s230_s7 = sadd.s32 8, %s601_s5 }
  0x26   : > { %s218_s10 = scalar_lea.vmem %s591_s1, %s603_s28  ;;  %s253_s28 = scalar_lea.sflag [#allocation5], %s213_s6 }
  0x27   : > { %s605_s7 = smov (!%p338_p3, %s230_s7), %s601_s5  ;;  %v247_v0 = vld [vmem:[%s218_s10] sm:$0x1]  ;;  %p396_p6 = pnand %p395_p5, %p523_p10 }
  0x28   : > { %p232_p4 = scmp.lt.s32.totalorder %s605_s7, 15  ;;  %s398_s30 = sshll.u32 %s461_s29, 4  ;;  %s399_s30 = int_to_ptr.vmem [resolvable:$false] %s398_s30 }
  0x29   : > { %p397_p7 = pneg %p396_p6  ;;  %s400_s4 = scalar_lea.vmem %s399_s30, 32 }
  0x2a   : > { %s607_s7 = smov (!%p232_p4, %s605_s7), 15  ;;  %p401_p8 = scmp.lt.s32.totalorder %s545_s12, %s399_s30 }
  0x2b   : > { %s234_s16 = scalar_lea.vmem %s592_s2, %s607_s7  ;;  %p402_p9 = scmp.lt.s32.totalorder %s400_s4, %s394_s20 }
  0x2c   : > { %v248_v1 = vld [vmem:[%s234_s16] sm:$0x1] }
  0x2d   : > { %v249_v2 = vadd.f32 %v248_v1, %v247_v0  ;;  %p403_p12 = por %p402_p9, %p401_p8 }
  0x2f   : > { %251 = vst.msk [vmem:[%s214_s11] sm:$0x1] %vm250_vm0, %v249_v2  ;;  %p404_p13 = pnand %p403_p12, %p397_p7 }
  0x31   : > { %407 = shalt.err (!%p404_p13)
}
  0x32   : > { %s408_s5 = scalar_lea.hbm %s550_s24, 16  ;;  %s412_s8 = scalar_lea.hbm %s593_s3, 256 }
  0x33   : > { %p409_p0 = scmp.ne.s32.totalorder %s550_s24, %s408_s5  ;;  %p413_p3 = scmp.lt.u32.totalorder %s550_s24, %s593_s3 }
  0x34   : > { %p414_p4 = scmp.lt.u32.totalorder %s412_s8, %s408_s5  ;;  %p416_p6 = scmp.lt.u32.totalorder %s408_s5, %s550_s24 }
  0x35   : > { %p410_p1 = pnand %p409_p0, %p523_p10 }
  0x36   : > { %p415_p5 = por %p414_p4, %p413_p3 }
  0x37   : > { %p411_p2 = pneg %p410_p1 }
  0x38   : > { %p417_p7 = por %p416_p6, %p415_p5 }
  0x3a   : > { %p418_p8 = pnand %p417_p7, %p411_p2 }
  0x3c   : > { %421 = shalt.err (!%p418_p8)
}
  0x3d   : > { %342 = dma.vmem_to_hbm [thread:$0]  (%p523_p10), %s545_s12, 16, %s550_s24, %s253_s28  }
  0x3e PF: > { %p348_p9 = scmp.ge.s32.totalorder %s458_s19, 2  ;;  %s277_s11 = sand.u32 1, %s446_s17  }
  0x3f   : > { %s278_s13 = scalar_lea.sflag [#allocation5], %s277_s11 }
  0x40   : > { %p345_p12 = pnand %p348_p9, %p527_p11 }
  0x42   : > { %441 = dma.done.wait (!%p345_p12), %s278_s13, 16  }
  0x43   : > { %443 = vsyncadd (!%p345_p12), %s278_s13, 4294967280  ;;  %p19_p13 = scmp.ge.s32.totalorder %s510_s22, 18   ;;  %s596_s17 = smov %s450_s18 }
  0x44   : > { %s597_s18 = smov %s454_s0  ;;  %s598_s0 = smov %s521_s25 }
  0x45   : > { %s599_s19 = smov %s510_s22  ;;  %21 = sbr.rel (!%p19_p13) target bundleno = 18 (0x12), region = 66 }
  0x4c   :  { %282 = vsyncpa [#allocation5], 1 }
  0x4d   :  { %284 = vsyncpa [#allocation5 + $0x1], 1 }

</bundles_post_ra>
